<compile_context>
chip_gen: v6e
topology: v6e:2x2x1
jax: 0.10.0
libtpu: 0.0.40
codegen_flags: <defaults>
</compile_context>

<pallas_src>
import functools

import jax
import jax.numpy as jnp
from jax.experimental import pallas as pl
from jax.experimental.pallas import tpu as pltpu


def _round_up(x, m):
    return (x + m - 1) // m * m


def _maxout_kernel(x_ref, w_ref, b_ref, o_ref, acc_ref, *, pool, tile_o):
    # x_ref:   (TB, TK)         compute dtype (bf16 by default)
    # w_ref:   (TK, pool*TO)    compute dtype, fused o-tile-major / p-major layout
    # b_ref:   (1, pool*TO)     float32
    # o_ref:   (TB, TO)         output dtype
    # acc_ref: (TB, pool*TO)    float32 K-reduction accumulator (VMEM scratch)
    k = pl.program_id(2)

    @pl.when(k == 0)
    def _init():
        acc_ref[...] = jnp.zeros_like(acc_ref)

    # One MXU matmul covering all `pool` candidates of this out-tile at once.
    acc_ref[...] += jnp.dot(x_ref[...], w_ref[...],
                            preferred_element_type=jnp.float32)

    @pl.when(k == pl.num_programs(2) - 1)
    def _finalize():
        y = acc_ref[...] + b_ref[...]          # bias broadcast once per block
        m = y[:, 0:tile_o]                     # seed max from p=0 (no -inf fill)
        for p in range(1, pool):               # pool is small & static -> unrolled
            m = jnp.maximum(m, y[:, p * tile_o:(p + 1) * tile_o])
        o_ref[...] = m.astype(o_ref.dtype)     # lane-dense (TO >= 128) store


def maxout_pallas(x, weight, bias, out_feature, pool_size, *,
                  tile_b=256, compute_dtype=jnp.bfloat16):
    """x: (..., in_feature); weight: (out*pool, in) torch-Linear layout; bias: (out*pool,).

    Returns shape (prod(leading dims), out_feature), matching torch's
    output.view(-1, out_feature, pool_size).max(2)[0].
    """
    in_feature = x.shape[-1]
    out_dtype = x.dtype
    x2d = x.reshape(-1, in_feature)
    n = x2d.shape[0]

    # ---- tile selection --------------------------------------------------
    # Batch tile: multiple of 16 (bf16 sublane packing), capped at tile_b.
    tb = min(tile_b, _round_up(n, 16))
    n_pad = _round_up(n, tb)
    # Out tile: multiple of 128 lanes, capped at 256 (MXU-edge on v6e/v7x).
    if _round_up(out_feature, 128) <= 256:
        to = _round_up(out_feature, 128)
    else:
        to = 256
    out_pad = _round_up(out_feature, to)
    n_ot = out_pad // to
    # K tile: whole in_feature when small, else a 512-wide reduction axis.
    if _round_up(in_feature, 128) <= 512:
        tk = in_feature
        k_pad = in_feature
    else:
        tk = 512
        k_pad = _round_up(in_feature, tk)

    # ---- glue: repack torch-Linear params into the fused layout ----------
    # Linear column index c = o*pool + p  (matches view(-1, out, pool)).
    w_f = weight.astype(compute_dtype).T                        # (in, out*pool)
    w_f = w_f.reshape(in_feature, out_feature, pool_size)       # (in, out, pool)
    w_f = jnp.pad(w_f, ((0, k_pad - in_feature),
                        (0, out_pad - out_feature), (0, 0)))
    w_f = w_f.reshape(k_pad, n_ot, to, pool_size)
    w_f = jnp.transpose(w_f, (0, 1, 3, 2))                      # (in, n_ot, pool, to)
    w_f = w_f.reshape(k_pad, n_ot * pool_size * to)             # (k_pad, pool*out_pad)

    b_f = bias.astype(jnp.float32).reshape(out_feature, pool_size)
    b_f = jnp.pad(b_f, ((0, out_pad - out_feature), (0, 0)))
    b_f = b_f.reshape(n_ot, to, pool_size)
    b_f = jnp.transpose(b_f, (0, 2, 1)).reshape(1, n_ot * pool_size * to)

    x_p = x2d.astype(compute_dtype)
    x_p = jnp.pad(x_p, ((0, n_pad - n), (0, k_pad - in_feature)))

    grid = (n_pad // tb, n_ot, k_pad // tk)

    kernel = functools.partial(_maxout_kernel, pool=pool_size, tile_o=to)

    cost = pl.CostEstimate(
        flops=2 * n_pad * k_pad * pool_size * out_pad,
        transcendentals=0,
        bytes_accessed=(x_p.size * x_p.dtype.itemsize
                        + w_f.size * w_f.dtype.itemsize
                        + b_f.size * 4
                        + n_pad * out_pad * jnp.dtype(out_dtype).itemsize),
    )

    out = pl.pallas_call(
        kernel,
        out_shape=jax.ShapeDtypeStruct((n_pad, out_pad), out_dtype),
        grid_spec=pltpu.PrefetchScalarGridSpec(
            num_scalar_prefetch=0,
            grid=grid,
            in_specs=[
                pl.BlockSpec((tb, tk), lambda i, j, k: (i, k)),
                pl.BlockSpec((tk, pool_size * to), lambda i, j, k: (k, j)),
                pl.BlockSpec((1, pool_size * to), lambda i, j, k: (0, j)),
            ],
            out_specs=pl.BlockSpec((tb, to), lambda i, j, k: (i, j)),
            scratch_shapes=[pltpu.VMEM((tb, pool_size * to), jnp.float32)],
        ),
        compiler_params=pltpu.CompilerParams(
            dimension_semantics=("parallel", "parallel", "arbitrary")),
        cost_estimate=cost,
    )(x_p, w_f, b_f)

    return out[:n, :out_feature]


def maxout_reference(x, weight, bias, out_feature, pool_size,
                     compute_dtype=jnp.bfloat16):
    """Pure-JAX reference with the same bf16 inputs / f32 accumulation."""
    x2d = x.reshape(-1, x.shape[-1]).astype(compute_dtype)
    y = jnp.dot(x2d, weight.astype(compute_dtype).T,
                preferred_element_type=jnp.float32) + bias.astype(jnp.float32)
    y = y.reshape(-1, out_feature, pool_size)
    return jnp.max(y, axis=2).astype(x.dtype)


if __name__ == "__main__":
    in_feature, out_feature, pool_size = 32, 16, 4
    lead = (2, 4)  # leading dims get flattened, matching view(-1, out, pool)

    key = jax.random.PRNGKey(0)
    kx, kw, kb = jax.random.split(key, 3)
    x = jax.random.normal(kx, lead + (in_feature,), dtype=jnp.float32)
    # torch-Linear layout: weight (out*pool, in), bias (out*pool,)
    weight = jax.random.normal(kw, (out_feature * pool_size, in_feature),
                               dtype=jnp.float32) * 0.1
    bias = jax.random.normal(kb, (out_feature * pool_size,),
                             dtype=jnp.float32) * 0.1

    out = maxout_pallas(x, weight, bias, out_feature, pool_size)
    out = jax.block_until_ready(out)

    ref = maxout_reference(x, weight, bias, out_feature, pool_size)
    assert out.shape == (lead[0] * lead[1], out_feature)
    assert jnp.allclose(out, ref, atol=1e-3, rtol=1e-3), \
        float(jnp.max(jnp.abs(out - ref)))

    print("KERNEL_OK")
</pallas_src>

<mosaic_0001>
module attributes {stable_mosaic.version = 11 : i64} {
  func.func @_maxout_kernel(%arg0: i32, %arg1: i32, %arg2: i32, %arg3: memref<16x32xbf16, #tpu.memory_space<vmem>>, %arg4: memref<32x512xbf16, #tpu.memory_space<vmem>>, %arg5: memref<1x512xf32, #tpu.memory_space<vmem>>, %arg6: memref<16x128xf32, #tpu.memory_space<vmem>>, %arg7: memref<16x512xf32, #tpu.memory_space<vmem>>) attributes {dimension_semantics = [#tpu.dimension_semantics<parallel>, #tpu.dimension_semantics<parallel>, #tpu.dimension_semantics<arbitrary>], iteration_bounds = array<i64: 1, 1, 1>, scalar_prefetch = 0 : i64, scratch_operands = 1 : i64, tpu.core_type = #tpu.core_type<tc>, window_params = [{transform_indices = @transform_0, window_bounds = array<i64: 16, 32>}, {transform_indices = @transform_1, window_bounds = array<i64: 32, 512>}, {transform_indices = @transform_2, window_bounds = array<i64: 1, 512>}, {transform_indices = @transform_3, window_bounds = array<i64: 16, 128>}]} {
    %c0_i32 = arith.constant 0 : i32
    %0 = arith.cmpi eq, %arg2, %c0_i32 : i32
    %1 = arith.extui %0 : i1 to i32
    %c0_i32_0 = arith.constant 0 : i32
    %2 = arith.cmpi ne, %1, %c0_i32_0 : i32
    scf.if %2 {
      %cst_10 = arith.constant 0.000000e+00 : f32
      %12 = vector.broadcast %cst_10 : f32 to vector<16x512xf32>
      %c0_11 = arith.constant 0 : index
      %c0_12 = arith.constant 0 : index
      %13 = vector.load %arg7[%c0_11, %c0_12] : memref<16x512xf32, #tpu.memory_space<vmem>>, vector<16x512xf32>
      tpu.vector_store %arg7[%c0_11, %c0_12], %12 {strides = array<i32>} : memref<16x512xf32, #tpu.memory_space<vmem>>, vector<16x512xf32>,
    } else {
    }
    %c0 = arith.constant 0 : index
    %c0_1 = arith.constant 0 : index
    %3 = vector.load %arg7[%c0, %c0_1] : memref<16x512xf32, #tpu.memory_space<vmem>>, vector<16x512xf32>
    %c0_2 = arith.constant 0 : index
    %c0_3 = arith.constant 0 : index
    %4 = vector.load %arg3[%c0_2, %c0_3] : memref<16x32xbf16, #tpu.memory_space<vmem>>, vector<16x32xbf16>
    %c0_4 = arith.constant 0 : index
    %c0_5 = arith.constant 0 : index
    %5 = vector.load %arg4[%c0_4, %c0_5] : memref<32x512xbf16, #tpu.memory_space<vmem>>, vector<32x512xbf16>
    %cst = arith.constant dense<0.000000e+00> : vector<16x512xf32>
    %6 = tpu.matmul %4, %5, %cst {dimension_numbers = #tpu.dot_dimension_numbers<[1], [0], [0], [1], [0, 0, 1, 1], [], []>} : vector<16x32xbf16>, vector<32x512xbf16>, vector<16x512xf32> -> vector<16x512xf32>
    %7 = arith.addf %3, %6 : vector<16x512xf32>
    %c0_6 = arith.constant 0 : index
    %c0_7 = arith.constant 0 : index
    %8 = vector.load %arg7[%c0_6, %c0_7] : memref<16x512xf32, #tpu.memory_space<vmem>>, vector<16x512xf32>
    tpu.vector_store %arg7[%c0_6, %c0_7], %7 {strides = array<i32>} : memref<16x512xf32, #tpu.memory_space<vmem>>, vector<16x512xf32>,
    %c0_i32_8 = arith.constant 0 : i32
    %9 = arith.cmpi eq, %arg2, %c0_i32_8 : i32
    %10 = arith.extui %9 : i1 to i32
    %c0_i32_9 = arith.constant 0 : i32
    %11 = arith.cmpi ne, %10, %c0_i32_9 : i32
    scf.if %11 {
      %c0_10 = arith.constant 0 : index
      %c0_11 = arith.constant 0 : index
      %12 = vector.load %arg7[%c0_10, %c0_11] : memref<16x512xf32, #tpu.memory_space<vmem>>, vector<16x512xf32>
      %c0_12 = arith.constant 0 : index
      %c0_13 = arith.constant 0 : index
      %13 = vector.load %arg5[%c0_12, %c0_13] : memref<1x512xf32, #tpu.memory_space<vmem>>, vector<1x512xf32>
      %14 = vector.broadcast %13 : vector<1x512xf32> to vector<16x512xf32>
      %15 = arith.addf %12, %14 : vector<16x512xf32>
      %16 = vector.extract_strided_slice %15 {offsets = [0, 0], sizes = [16, 128], strides = [1, 1]} : vector<16x512xf32> to vector<16x128xf32>
      %17 = vector.extract_strided_slice %15 {offsets = [0, 128], sizes = [16, 128], strides = [1, 1]} : vector<16x512xf32> to vector<16x128xf32>
      %18 = arith.maximumf %16, %17 : vector<16x128xf32>
      %19 = vector.extract_strided_slice %15 {offsets = [0, 256], sizes = [16, 128], strides = [1, 1]} : vector<16x512xf32> to vector<16x128xf32>
      %20 = arith.maximumf %18, %19 : vector<16x128xf32>
      %21 = vector.extract_strided_slice %15 {offsets = [0, 384], sizes = [16, 128], strides = [1, 1]} : vector<16x512xf32> to vector<16x128xf32>
      %22 = arith.maximumf %20, %21 : vector<16x128xf32>
      %c0_14 = arith.constant 0 : index
      %c0_15 = arith.constant 0 : index
      %23 = vector.load %arg6[%c0_14, %c0_15] : memref<16x128xf32, #tpu.memory_space<vmem>>, vector<16x128xf32>
      tpu.vector_store %arg6[%c0_14, %c0_15], %22 {strides = array<i32>} : memref<16x128xf32, #tpu.memory_space<vmem>>, vector<16x128xf32>,
    } else {
    }
    return
  }
  func.func @transform_0(%arg0: i32, %arg1: i32, %arg2: i32) -> (i32, i32) {
    %c0_i32 = arith.constant 0 : i32
    return %arg0, %arg2 : i32, i32
  }
  func.func @transform_1(%arg0: i32, %arg1: i32, %arg2: i32) -> (i32, i32) {
    %c0_i32 = arith.constant 0 : i32
    return %arg2, %arg1 : i32, i32
  }
  func.func @transform_2(%arg0: i32, %arg1: i32, %arg2: i32) -> (i32, i32) {
    %c0_i32 = arith.constant 0 : i32
    %c0_i32_0 = arith.constant 0 : i32
    return %c0_i32, %arg1 : i32, i32
  }
  func.func @transform_3(%arg0: i32, %arg1: i32, %arg2: i32) -> (i32, i32) {
    %c0_i32 = arith.constant 0 : i32
    return %arg0, %arg1 : i32, i32
  }
}

</mosaic_0001>

<bundles_post_ra>
// kernel: tpu_custom_call.1
= control target key start
LH: loop header
LB: loop body
LE: loop exit
PB: predicated region body
PF: predicated region fallthrough
CT: control target
= control target key end

     0   :  { %8 = vsyncpa [#allocation4], 0  ;;  %s467_s0 = inlined_call_operand.hbm [shape: bf16[16,32], index: 0, kind: input, shape index: {}]   ;;  %s468_s1 = inlined_call_operand.hbm [shape: bf16[32,512], index: 1, kind: input, shape index: {}]   ;;  %s469_s2 = inlined_call_operand.hbm [shape: f32[1,512], index: 2, kind: input, shape index: {}]   ;;  %s470_s3 = inlined_call_operand.hbm [shape: f32[16,128], index: 3, kind: output, shape index: {}]  }
   0x1   :  { %9 = vsyncpa [#allocation7], 0 }
   0x2   :  { %10 = vsyncpa [#allocation5], 0  ;;  %s424_s12 = smov [#allocation6]  }
   0x3   :  { %s28_s13 = sshll.u32 %s424_s12, 4  ;;  %s29_s13 = int_to_ptr.vmem [resolvable:$true] %s28_s13 }
   0x4   :  { %s346_s14 = scalar_lea.vmem %s29_s13, 1024  ;;  %p351_p1 = scmp.lt.s32.totalorder %s29_s13, %s29_s13 }
   0x5   :  { %p347_p0 = scmp.ne.s32.totalorder %s29_s13, %s346_s14  ;;  %p352_p2 = scmp.lt.s32.totalorder %s346_s14, %s346_s14 }
   0x7   :  { %p353_p3 = por %p352_p2, %p351_p1 }
   0x9   :  { %p354_p4 = pnand %p353_p3, %p347_p0 }
   0xb   :  { %357 = shalt.err (!%p354_p4)
}
   0xc   :  { %s425_s15 = smov 256   ;;  %s426_s16 = smov 16  }
   0xd   :  { %34 = dma.hbm_to_vmem [thread:$0]  %s468_s1, 1024, %s29_s13, [#allocation7], %s425_s15, %s425_s15, %s426_s16  }
   0xe   :  { %s427_s19 = smov [#allocation3]  }
   0xf   :  { %s16_s20 = sshll.u32 %s427_s19, 4  ;;  %s17_s20 = int_to_ptr.vmem [resolvable:$true] %s16_s20 }
  0x10   :  { %s366_s21 = scalar_lea.vmem %s17_s20, 128  ;;  %p371_p6 = scmp.lt.s32.totalorder %s17_s20, %s17_s20 }
  0x11   :  { %p367_p5 = scmp.ne.s32.totalorder %s17_s20, %s366_s21  ;;  %p372_p7 = scmp.lt.s32.totalorder %s366_s21, %s366_s21 }
  0x13   :  { %p373_p8 = por %p372_p7, %p371_p6 }
  0x15   :  { %p374_p9 = pnand %p373_p8, %p367_p5 }
  0x17   :  { %377 = shalt.err (!%p374_p9)
}
  0x18   :  { %s428_s22 = smov 64   ;;  %s429_s23 = smov 4  }
  0x19   :  { %22 = dma.hbm_to_vmem [thread:$0]  %s467_s0, 128, %s17_s20, [#allocation4], %s428_s22, %s428_s22, %s429_s23  }
  0x1a   :  { %s430_s26 = smov [#allocation8]  }
  0x1b   :  { %s41_s27 = sshll.u32 %s430_s26, 4  ;;  %s42_s27 = int_to_ptr.vmem [resolvable:$true] %s41_s27 }
  0x1c   :  { %s386_s1 = scalar_lea.vmem %s42_s27, 64  ;;  %p391_p11 = scmp.lt.s32.totalorder %s42_s27, %s42_s27 }
  0x1d   :  { %p387_p10 = scmp.ne.s32.totalorder %s42_s27, %s386_s1  ;;  %p392_p12 = scmp.lt.s32.totalorder %s386_s1, %s386_s1 }
  0x1f   :  { %p393_p13 = por %p392_p12, %p391_p11 }
  0x21   :  { %p394_p0 = pnand %p393_p13, %p387_p10 }
  0x23   :  { %397 = shalt.err (!%p394_p0)
}
  0x24   :  { %44 = dma.hbm_to_vmem [thread:$0]  %s469_s2, 64, %s42_s27, [#allocation7]  }
  0x25   :  { %418 = dma.done.wait [#allocation4], 128  }
  0x26   :  { %419 = vsyncadd [#allocation4], 4294967168 }
  0x27   :  { %420 = dma.done.wait [#allocation7], 1088  }
  0x28   :  { %421 = vsyncadd [#allocation7], 4294966208  ;;  %v431_v0 = vmov 0   ;;  %v325_v1 = vld [vmem:[#allocation6 + $0x24] ss:$16 sps:$4 sm:$0xff]   ;;  %v337_v9 = vld [vmem:[#allocation3] sm:$0xff]   ;;  %v249_v10 = vlaneseq }
  0x29   :  { %166 = vmatprep.mubr.bf16.mxu0 %v431_v0  ;;  %209 = vmatprep.mubr.bf16.mxu1 %v431_v0  ;;  %v327_v2 = vld [vmem:[#allocation6 + $0x2c] ss:$16 sps:$4 sm:$0xff]   ;;  %v329_v3 = vld [vmem:[#allocation6 + $0x20] ss:$16 sps:$4 sm:$0xff]   ;;  %v330_v4 = vld [vmem:[#allocation6 + $0x28] ss:$16 sps:$4 sm:$0xff]  }
  0x2a   :  { %146 = vmatprep.subr.bf16.mxu0 %v325_v1  ;;  %189 = vmatprep.subr.bf16.mxu1 %v327_v2  ;;  %v331_v5 = vld [vmem:[#allocation6 + $0x4] ss:$16 sps:$4 sm:$0xff]   ;;  %v333_v6 = vld [vmem:[#allocation6 + $0xc] ss:$16 sps:$4 sm:$0xff]   ;;  %v335_v7 = vld [vmem:[#allocation6] ss:$16 sps:$4 sm:$0xff]  }
  0x2b   :  { %147 = vmatpush1.bf16.msra.mxu0 %v329_v3  ;;  %190 = vmatpush1.bf16.msra.mxu1 %v330_v4  ;;  %v336_v8 = vld [vmem:[#allocation6 + $0x8] ss:$16 sps:$4 sm:$0xff]   ;;  %vm130_vm0 = vcmask 261120   ;;  %v250_v11 = vshrl.u32 %v249_v10, 7  ;;  %v247_v15 = vld [vmem:[#allocation8] sm:$0xf] }
  0x2c   :  { %148 = vmatprep.subr.bf16.mxu0 %v331_v5  ;;  %191 = vmatprep.subr.bf16.mxu1 %v333_v6  ;;  %s432_s0 = smov [#allocation9]  }
  0x2d   :  { %v251_v12 = vsub.s32 0, %v250_v11  ;;  %v259_v13 = vsub.s32 2, %v250_v11  ;;  %v255_v14 = vsub.s32 1, %v250_v11  ;;  %v263_v19 = vsub.s32 3, %v250_v11  ;;  %s290_s2 = sshll.u32 %s432_s0, 4  ;;  %s291_s2 = int_to_ptr.vmem [resolvable:$true] %s290_s2 }
  0x2e   :  { %s398_s30 = scalar_lea.vmem %s291_s2, 256  ;;  %p403_p2 = scmp.lt.s32.totalorder %s291_s2, %s291_s2 }
  0x2f   :  { %149 = vmatpush1.bf16.msra.mxu0 %v335_v7  ;;  %192 = vmatpush1.bf16.msra.mxu1 %v336_v8  ;;  %v252_v16 = vrot.slane %v247_v15, %v251_v12  ;;  %v260_v17 = vrot.slane %v247_v15, %v259_v13  ;;  %v256_v18 = vrot.slane %v247_v15, %v255_v14  ;;  %p399_p1 = scmp.ne.s32.totalorder %s291_s2, %s398_s30  ;;  %p404_p3 = scmp.lt.s32.totalorder %s398_s30, %s398_s30 }
  0x30   :  { %v264_v27 = vrot.slane %v247_v15, %v263_v19 }
  0x31   :  { %p405_p4 = por %p404_p3, %p403_p2 }
  0x32   :  { %312 = vmatmul.mubr.msk.bf16.vlgmr.msra.gmra.mxu0 %vm130_vm0, %v337_v9  ;;  %313 = vmatmul.mubr.msk.bf16.vlgmr.msra.gmra.mxu1 %vm130_vm0, %v337_v9 }
  0x33   :  { %p406_p5 = pnand %p405_p4, %p399_p1 }
  0xf2   :  { %v168_v20 = vpop.f32.mrf.mxu0  ;;  %v211_v21 = vpop.f32.mrf.mxu1 }
  0xf3   :  { %v269_v24 = vadd.f32 %v252_v16, %v168_v20  ;;  %v271_v25 = vadd.f32 %v260_v17, %v211_v21 }
  0xf4   :  { %v170_v22 = vpop.f32.mrf.mxu0  ;;  %v213_v23 = vpop.f32.mrf.mxu1 }
  0xf5   :  { %v270_v26 = vadd.f32 %v256_v18, %v170_v22  ;;  %v272_v32 = vadd.f32 %v264_v27, %v213_v23 }
  0xf6   :  { %v172_v28 = vpop.f32.mrf.mxu0  ;;  %v215_v29 = vpop.f32.mrf.mxu1 }
  0xf7   :  { %v277_v30 = vmax.f32 %v269_v24, %v270_v26  ;;  %v273_v34 = vadd.f32 %v252_v16, %v172_v28  ;;  %v275_v38 = vadd.f32 %v260_v17, %v215_v29 }
  0xf8   :  { %v174_v31 = vpop.f32.mrf.mxu0  ;;  %v217_v36 = vpop.f32.mrf.mxu1 }
  0xf9   :  { %v279_v33 = vmax.f32 %v277_v30, %v271_v25  ;;  %v274_v35 = vadd.f32 %v256_v18, %v174_v31  ;;  %v276_v40 = vadd.f32 %v264_v27, %v217_v36 }
  0xfb   :  { %v281_v37 = vmax.f32 %v279_v33, %v272_v32  ;;  %v278_v39 = vmax.f32 %v273_v34, %v274_v35 }
  0xfd   :  { %283 = vst [vmem:[#allocation9] sm:$0xff] %v281_v37  ;;  %v280_v41 = vmax.f32 %v278_v39, %v275_v38 }
  0xff   :  { %v282_v42 = vmax.f32 %v280_v41, %v276_v40 }
 0x101   :  { %284 = vst [vmem:[#allocation9 + $0x8] sm:$0xff] %v282_v42 }
 0x102   :  { %409 = shalt.err (!%p406_p5)
}
 0x103   :  { %s433_s4 = smov 128   ;;  %s434_s5 = smov 8  }
 0x104   :  { %296 = dma.vmem_to_hbm [thread:$0]  %s291_s2, 256, %s470_s3, [#allocation5], %s433_s4, %s433_s4, %s434_s5  }
 0x105   :  { %422 = dma.done.wait [#allocation5], 256  }
 0x106   :  { %423 = vsyncadd [#allocation5], 4294967040 }
 0x107   :  { %300 = vsyncpa [#allocation4], 1 }
 0x108   :  { %301 = vsyncpa [#allocation7], 1 }
 0x109   :  { %302 = vsyncpa [#allocation5], 1 }

</bundles_post_ra>
